<compile_context>
chip_gen: v7x
topology: tpu7x:2x2x1
jax: 0.10.0
libtpu: 0.0.40
codegen_flags: <defaults>
</compile_context>

<pallas_src>
import functools

import jax
import jax.numpy as jnp
from jax import lax
from jax.experimental import pallas as pl
from jax.experimental.pallas import tpu as pltpu

_INF = -1e30
_LN_EPS = 1e-5  # torch.nn.LayerNorm default eps


def _rel_attn_kernel(w_ref, wq_ref, kr_ref, v_ref, kbias_ref, wo_ref,
                     gamma_ref, beta_ref, *rest, n_head, d_head, has_mask,
                     exact_recip):
    """One grid step == (one batch element) x (one q tile); heads streamed inside.

    w_ref:      (1, TQ, d_model)   f32 (residual kept in full precision)
    wq_ref:     (d_model, H*D)     compute dtype, transposed, pre-scaled by 1/sqrt(D)
    kr_ref:     (1, H, D, klen)    compute dtype: per-head (K_h + shifted r_emb_h)^T
    v_ref:      (1, H, klen, D)    compute dtype
    kbias_ref:  (1, H, 1, klen)    f32: scale*(r_w_bias_h . K_h + shifted r_bias_h)
    wo_ref:     (H, D, d_model)    compute dtype (o_net weight, per-head slabs)
    gamma/beta: (1, d_model)       f32
    mask_ref:   (1, TQ, klen)      compute dtype additive mask (only if has_mask)
    out_ref:    (1, TQ, d_model)
    """
    if has_mask:
        mask_ref, out_ref = rest
    else:
        (out_ref,) = rest
    f32 = jnp.float32
    cdt = wq_ref.dtype

    w32 = w_ref[0]                                                   # (TQ, d_model)
    w_c = w32.astype(cdt)

    # Full-width Q projection (N = H*D keeps the MXU wide); scale folded into wq.
    q = jnp.dot(w_c, wq_ref[...], preferred_element_type=f32)       # (TQ, H*D)
    q_c = q.astype(cdt)

    maskb = mask_ref[0].astype(f32) if has_mask else None           # (TQ, klen)

    acc = None                                                       # (TQ, d_model) f32
    for h in range(n_head):
        q_h = q_c[:, h * d_head:(h + 1) * d_head]                    # (TQ, D)
        # score_h = (scale*q_h) @ (K_h + shifted r_emb_h)^T + kbias_h (+ mask)
        s = jnp.dot(q_h, kr_ref[0, h], preferred_element_type=f32)   # (TQ, klen)
        s = s + kbias_ref[0, h]                                      # (1, klen) bcast
        if has_mask:
            s = s + maskb
        # softmax over keys in f32 (additive -1e30 == masked_fill in f32)
        m = jnp.max(s, axis=-1, keepdims=True)
        e = jnp.exp(s - m)
        denom = jnp.sum(e, axis=-1, keepdims=True)
        if exact_recip:
            p = (e / denom).astype(cdt)                              # strict path
        else:
            p = (e * pl.reciprocal(denom, approx=True)).astype(cdt)  # EUP reciprocal
        # TODO(synk): dropatt / drop are identity (eval mode); no RNG applied.
        o_h = jnp.dot(p, v_ref[0, h], preferred_element_type=f32)    # (TQ, D)
        proj = jnp.dot(o_h.astype(cdt), wo_ref[h],
                       preferred_element_type=f32)                   # (TQ, d_model)
        acc = proj if acc is None else acc + proj

    # residual + post-LayerNorm (pre_lnorm=False), f32
    out = w32 + acc
    mu = jnp.mean(out, axis=-1, keepdims=True)
    var = jnp.mean(jnp.square(out - mu), axis=-1, keepdims=True)
    normed = (out - mu) * lax.rsqrt(var + _LN_EPS)
    out_ref[0] = (normed * gamma_ref[...] + beta_ref[...]).astype(out_ref.dtype)


def _tpu_vmem_capacity():
    try:
        info = pltpu.get_tpu_info()
        cap = getattr(info, "vmem_capacity_bytes", None)
        if cap:
            return int(cap)
    except Exception:
        pass
    return 64 * 1024 * 1024   # conservative default (v7x-sized)


def _pick_tq(qlen, max_tq):
    for t in (256, 128, 64, 32, 16, 8):
        if t <= max_tq and qlen % t == 0:
            return t
    return qlen


def _single_buffered_spec(shape, index_map):
    # Grid-constant operands: request one VMEM buffer so the default
    # double-buffering does not duplicate weights (VMEM win, critical on v7x).
    try:
        return pl.BlockSpec(shape, index_map, pipeline_mode=pl.Buffered(1))
    except Exception:
        return pl.BlockSpec(shape, index_map)


def rel_learnable_mha(w, r_emb, r_w_bias, r_bias, params, attn_mask=None,
                      mems=None, *, n_head, d_head,
                      compute_dtype=jnp.bfloat16, out_dtype=None):
    """Pallas implementation of RelLearnableMultiHeadAttn.forward (pre_lnorm=False).

    compute_dtype: dtype of the matmul operands (bf16 = perf path, f32 = exact).
    Accumulation, softmax, residual and LayerNorm are always f32.
    """
    wq, wk, wv, wo, gamma, beta = params
    bsz, qlen, d_model = w.shape
    hd = n_head * d_head
    scale = 1.0 / (d_head ** 0.5)
    cdt = compute_dtype
    if out_dtype is None:
        out_dtype = jnp.float32 if cdt == jnp.float32 else jnp.bfloat16
    prec = lax.Precision.HIGHEST if cdt == jnp.float32 else lax.Precision.DEFAULT

    # --- glue: mems concat + r_emb / r_bias length adjustment (exact torch logic)
    c = w if mems is None else jnp.concatenate([mems, w], axis=1)
    klen = c.shape[1]
    rlen = r_emb.shape[0]
    if klen > rlen:
        pad = klen - rlen
        r_emb = jnp.concatenate(
            [jnp.broadcast_to(r_emb[0:1], (pad,) + r_emb.shape[1:]), r_emb], axis=0)
        r_bias = jnp.concatenate(
            [jnp.broadcast_to(r_bias[0:1], (pad, r_bias.shape[1])), r_bias], axis=0)
    elif klen < rlen:
        r_emb = r_emb[-klen:]
        r_bias = r_bias[-klen:]

    # --- fold this module's _rel_shift (uniform shift-left-by-1 along klen,
    #     last column zeroed -- plain pad+slice, no view reinterpretation).
    r_emb_s = jnp.concatenate([r_emb[1:], jnp.zeros_like(r_emb[:1])], axis=0)     # (klen,H,D)
    r_bias_s = jnp.concatenate([r_bias[1:], jnp.zeros_like(r_bias[:1])], axis=0)  # (klen,H)

    # --- hoisted K/V projections: one XLA GEMM each per batch (NOT per q tile)
    k = jnp.einsum('bkm,nm->bkn', c, wk,
                   precision=prec).reshape(bsz, klen, n_head, d_head)
    v = jnp.einsum('bkm,nm->bkn', c, wv,
                   precision=prec).reshape(bsz, klen, n_head, d_head)

    # --- fold B_ / r_bias / r_w_bias into the K side:
    #     score = (scale*q) . (k + r_emb_s)  +  scale*(r_w_bias . k + r_bias_s)
    kr = (k + r_emb_s[None]).transpose(0, 2, 3, 1).astype(cdt)        # (bsz,H,D,klen)
    v_r = v.transpose(0, 2, 1, 3).astype(cdt)                         # (bsz,H,klen,D)
    kbias = scale * (jnp.einsum('bkhd,hd->bhk', k, r_w_bias, precision=prec)
                     + r_bias_s.T[None])                              # (bsz,H,klen)
    kbias = kbias.reshape(bsz, n_head, 1, klen).astype(jnp.float32)

    wq_t = (wq.T * scale).astype(cdt)                                 # (d_model, H*D)
    wo_r = wo.T.reshape(n_head, d_head, d_model).astype(cdt)          # (H, D, d_model)
    gamma2 = gamma.reshape(1, d_model).astype(jnp.float32)
    beta2 = beta.reshape(1, d_model).astype(jnp.float32)
    w_f32 = w.astype(jnp.float32)                                     # residual in f32

    # --- additive mask (only materialized when a mask exists), compute dtype
    has_mask = attn_mask is not None
    if has_mask:
        mb = jnp.where(attn_mask != 0, _INF, 0.0).astype(cdt)
        if attn_mask.ndim == 2:          # (qlen, klen): shared across batch/heads
            maskb = mb.reshape(1, qlen, klen)
            mask_bdep = False
        elif attn_mask.ndim == 3:        # (bsz, qlen, klen): per-batch
            maskb = mb.reshape(bsz, qlen, klen)
            mask_bdep = True
        else:
            raise ValueError("attn_mask must be 2-D or 3-D")

    # --- tiling: chip-dependent TQ / VMEM limit
    vmem_cap = _tpu_vmem_capacity()
    big_vmem = vmem_cap >= 100 * 1024 * 1024        # v5e/v6e (128 MiB) vs v7x (64 MiB)
    tq = _pick_tq(qlen, 256 if big_vmem else 128)
    n_qt = qlen // tq
    vmem_limit = (100 if big_vmem else 48) * 1024 * 1024

    kernel = functools.partial(_rel_attn_kernel, n_head=n_head, d_head=d_head,
                               has_mask=has_mask,
                               exact_recip=(cdt == jnp.float32))

    in_specs = [
        pl.BlockSpec((1, tq, d_model), lambda b, qi: (b, qi, 0)),                 # w (f32)
        _single_buffered_spec((d_model, hd), lambda b, qi: (0, 0)),               # wq^T*scale
        pl.BlockSpec((1, n_head, d_head, klen), lambda b, qi: (b, 0, 0, 0)),      # kr
        pl.BlockSpec((1, n_head, klen, d_head), lambda b, qi: (b, 0, 0, 0)),      # v
        pl.BlockSpec((1, n_head, 1, klen), lambda b, qi: (b, 0, 0, 0)),           # kbias
        _single_buffered_spec((n_head, d_head, d_model), lambda b, qi: (0, 0, 0)),# wo
        _single_buffered_spec((1, d_model), lambda b, qi: (0, 0)),                # gamma
        _single_buffered_spec((1, d_model), lambda b, qi: (0, 0)),                # beta
    ]
    args = [w_f32, wq_t, kr, v_r, kbias, wo_r, gamma2, beta2]
    if has_mask:
        mask_map = (lambda b, qi: (b, qi, 0)) if mask_bdep else (lambda b, qi: (0, qi, 0))
        in_specs.append(pl.BlockSpec((1, tq, klen), mask_map))
        args.append(maskb)

    out = pl.pallas_call(
        kernel,
        out_shape=jax.ShapeDtypeStruct((bsz, qlen, d_model), out_dtype),
        grid=(bsz, n_qt),
        in_specs=in_specs,
        out_specs=pl.BlockSpec((1, tq, d_model), lambda b, qi: (b, qi, 0)),
        compiler_params=pltpu.CompilerParams(
            dimension_semantics=("parallel", "parallel"),
            vmem_limit_bytes=vmem_limit),
    )(*args)
    return out


def reference(w, r_emb, r_w_bias, r_bias, params, attn_mask=None, mems=None,
              *, n_head, d_head):
    """Pure-JAX transcription of the PyTorch forward (eval mode, pre_lnorm=False)."""
    wq, wk, wv, wo, gamma, beta = params
    bsz, qlen, d_model = w.shape
    scale = 1.0 / (d_head ** 0.5)
    P = lax.Precision.HIGHEST
    c = w if mems is None else jnp.concatenate([mems, w], axis=1)
    klen = c.shape[1]
    rlen = r_emb.shape[0]
    if klen > rlen:
        pad = klen - rlen
        r_emb = jnp.concatenate(
            [jnp.broadcast_to(r_emb[0:1], (pad,) + r_emb.shape[1:]), r_emb], axis=0)
        r_bias = jnp.concatenate(
            [jnp.broadcast_to(r_bias[0:1], (pad, r_bias.shape[1])), r_bias], axis=0)
    elif klen < rlen:
        r_emb = r_emb[-klen:]
        r_bias = r_bias[-klen:]
    q = jnp.einsum('bim,hm->bih', w, wq, precision=P).reshape(bsz, qlen, n_head, d_head)
    k = jnp.einsum('bjm,hm->bjh', c, wk, precision=P).reshape(bsz, klen, n_head, d_head)
    v = jnp.einsum('bjm,hm->bjh', c, wv, precision=P).reshape(bsz, klen, n_head, d_head)
    rw_q = q + r_w_bias[None, None]
    AC = jnp.einsum('bind,bjnd->bijn', rw_q, k, precision=P)
    B_ = jnp.einsum('bind,jnd->bijn', q, r_emb, precision=P)
    BD_pre = B_ + r_bias[None, None]
    # this module's _rel_shift: pad one zero column at the end of dim 2, drop first
    BD = jnp.concatenate([BD_pre[:, :, 1:, :], jnp.zeros_like(BD_pre[:, :, :1, :])],
                         axis=2)
    score = (AC + BD) * scale
    if attn_mask is not None:
        if attn_mask.ndim == 2:
            score = jnp.where(attn_mask[None, :, :, None] != 0, _INF, score)
        else:
            score = jnp.where(attn_mask[:, :, :, None] != 0, _INF, score)
    prob = jax.nn.softmax(score, axis=2)
    vec = jnp.einsum('bijn,bjnd->bind', prob, v,
                     precision=P).reshape(bsz, qlen, n_head * d_head)
    out = w + jnp.einsum('bih,mh->bim', vec, wo, precision=P)
    mu = out.mean(-1, keepdims=True)
    var = ((out - mu) ** 2).mean(-1, keepdims=True)
    return (out - mu) / jnp.sqrt(var + _LN_EPS) * gamma + beta


if __name__ == "__main__":
    # Small shapes consistent with the module.
    bsz, qlen, d_model, n_head, d_head = 2, 8, 32, 4, 8
    mem_len = 8
    rlen = qlen
    hd = n_head * d_head
    scale = 1.0 / (d_head ** 0.5)

    key = jax.random.PRNGKey(0)
    ks = jax.random.split(key, 9)
    # nn.init.normal_(weight, 0, scale) for q/k/v/o nets; LayerNorm default init.
    wq = jax.random.normal(ks[0], (hd, d_model), jnp.float32) * scale
    wk = jax.random.normal(ks[1], (hd, d_model), jnp.float32) * scale
    wv = jax.random.normal(ks[2], (hd, d_model), jnp.float32) * scale
    wo = jax.random.normal(ks[3], (d_model, hd), jnp.float32) * scale
    gamma = jnp.ones((d_model,), jnp.float32)
    beta = jnp.zeros((d_model,), jnp.float32)
    params = (wq, wk, wv, wo, gamma, beta)

    w = jax.random.normal(ks[4], (bsz, qlen, d_model), jnp.float32)
    r_emb = jax.random.normal(ks[5], (rlen, n_head, d_head), jnp.float32)
    r_w_bias = jax.random.normal(ks[6], (n_head, d_head), jnp.float32)
    r_bias = jax.random.normal(ks[7], (rlen, n_head), jnp.float32)
    mems = jax.random.normal(ks[8], (bsz, mem_len, d_model), jnp.float32)

    i = jnp.arange(qlen)[:, None]
    # case 2: mems present (klen = mem_len + qlen > rlen triggers the pad path)
    #         + standard 2-D causal mask.
    j2 = jnp.arange(mem_len + qlen)[None, :]
    causal2d = j2 > (i + mem_len)
    # case 3: no mems + 3-D (per-batch) mask; batch 1 additionally masks some
    #         past positions (diagonal always kept -> no fully-masked rows).
    j3 = jnp.arange(qlen)[None, :]
    base = j3 > i
    extra = (j3 < i) & (((i + j3) % 2) == 1)
    mask3d = jnp.stack([base, base | extra], axis=0)

    cases = [
        ("no_mask_no_mems", None, None),
        ("mems_causal2d", causal2d, mems),
        ("per_batch_mask3d", mask3d, None),
    ]

    for name, attn_mask, m in cases:
        ref = reference(w, r_emb, r_w_bias, r_bias, params,
                        attn_mask=attn_mask, mems=m,
                        n_head=n_head, d_head=d_head)

        # strict validation path: f32 operands, exact divide, f32 output
        out32 = rel_learnable_mha(w, r_emb, r_w_bias, r_bias, params,
                                  attn_mask=attn_mask, mems=m,
                                  n_head=n_head, d_head=d_head,
                                  compute_dtype=jnp.float32)
        out32 = jax.block_until_ready(out32)
        assert out32.shape == (bsz, qlen, d_model)
        err32 = float(jnp.max(jnp.abs(out32 - ref)))
        assert err32 < 2e-3, f"{name}: f32 max abs err {err32}"

        # perf path: bf16 MXU operands, f32 accumulation, approx reciprocal,
        # bf16 output
        outbf = rel_learnable_mha(w, r_emb, r_w_bias, r_bias, params,
                                  attn_mask=attn_mask, mems=m,
                                  n_head=n_head, d_head=d_head,
                                  compute_dtype=jnp.bfloat16)
        outbf = jax.block_until_ready(outbf)
        assert bool(jnp.all(jnp.isfinite(outbf))), f"{name}: non-finite bf16 output"
        errbf = float(jnp.max(jnp.abs(outbf.astype(jnp.float32) - ref)))
        assert errbf < 0.3, f"{name}: bf16 max abs err {errbf}"  # bf16 rounding headroom

    print("KERNEL_OK")
</pallas_src>

<mosaic_0001>
module attributes {stable_mosaic.version = 11 : i64} {
  func.func @_rel_attn_kernel(%arg0: i32, %arg1: i32, %arg2: memref<1x8x32xf32, #tpu.memory_space<vmem>>, %arg3: memref<32x32xf32, #tpu.memory_space<vmem>>, %arg4: memref<1x4x8x8xf32, #tpu.memory_space<vmem>>, %arg5: memref<1x4x8x8xf32, #tpu.memory_space<vmem>>, %arg6: memref<1x4x1x8xf32, #tpu.memory_space<vmem>>, %arg7: memref<4x8x32xf32, #tpu.memory_space<vmem>>, %arg8: memref<1x32xf32, #tpu.memory_space<vmem>>, %arg9: memref<1x32xf32, #tpu.memory_space<vmem>>, %arg10: memref<1x8x32xf32, #tpu.memory_space<vmem>>) attributes {dimension_semantics = [#tpu.dimension_semantics<parallel>, #tpu.dimension_semantics<parallel>], iteration_bounds = array<i64: 2, 1>, scalar_prefetch = 0 : i64, scratch_operands = 0 : i64, tpu.core_type = #tpu.core_type<tc>, window_params = [{transform_indices = @transform_0, window_bounds = array<i64: 1, 8, 32>}, {pipeline_mode = #tpu.pipeline_mode<synchronous>, transform_indices = @transform_1, window_bounds = array<i64: 32, 32>}, {transform_indices = @transform_2, window_bounds = array<i64: 1, 4, 8, 8>}, {transform_indices = @transform_3, window_bounds = array<i64: 1, 4, 8, 8>}, {transform_indices = @transform_4, window_bounds = array<i64: 1, 4, 1, 8>}, {pipeline_mode = #tpu.pipeline_mode<synchronous>, transform_indices = @transform_5, window_bounds = array<i64: 4, 8, 32>}, {pipeline_mode = #tpu.pipeline_mode<synchronous>, transform_indices = @transform_6, window_bounds = array<i64: 1, 32>}, {pipeline_mode = #tpu.pipeline_mode<synchronous>, transform_indices = @transform_7, window_bounds = array<i64: 1, 32>}, {transform_indices = @transform_8, window_bounds = array<i64: 1, 8, 32>}]} {
    %c0 = arith.constant 0 : index
    %c0_0 = arith.constant 0 : index
    %c0_1 = arith.constant 0 : index
    %0 = vector.load %arg2[%c0, %c0_0, %c0_1] : memref<1x8x32xf32, #tpu.memory_space<vmem>>, vector<1x8x32xf32>
    %1 = vector.shape_cast %0 : vector<1x8x32xf32> to vector<8x32xf32>
    %c0_2 = arith.constant 0 : index
    %c0_3 = arith.constant 0 : index
    %2 = vector.load %arg3[%c0_2, %c0_3] : memref<32x32xf32, #tpu.memory_space<vmem>>, vector<32x32xf32>
    %cst = arith.constant dense<0.000000e+00> : vector<8x32xf32>
    %3 = tpu.matmul %1, %2, %cst {dimension_numbers = #tpu.dot_dimension_numbers<[1], [0], [0], [1], [0, 0, 1, 1], [], []>} : vector<8x32xf32>, vector<32x32xf32>, vector<8x32xf32> -> vector<8x32xf32>
    %4 = vector.extract_strided_slice %3 {offsets = [0, 0], sizes = [8, 8], strides = [1, 1]} : vector<8x32xf32> to vector<8x8xf32>
    %c0_4 = arith.constant 0 : index
    %c0_5 = arith.constant 0 : index
    %c0_6 = arith.constant 0 : index
    %c0_7 = arith.constant 0 : index
    %5 = vector.load %arg4[%c0_4, %c0_5, %c0_6, %c0_7] : memref<1x4x8x8xf32, #tpu.memory_space<vmem>>, vector<1x1x8x8xf32>
    %6 = vector.shape_cast %5 : vector<1x1x8x8xf32> to vector<8x8xf32>
    %cst_8 = arith.constant dense<0.000000e+00> : vector<8x8xf32>
    %7 = tpu.matmul %4, %6, %cst_8 {dimension_numbers = #tpu.dot_dimension_numbers<[1], [0], [0], [1], [0, 0, 1, 1], [], []>} : vector<8x8xf32>, vector<8x8xf32>, vector<8x8xf32> -> vector<8x8xf32>
    %c0_9 = arith.constant 0 : index
    %c0_10 = arith.constant 0 : index
    %c0_11 = arith.constant 0 : index
    %c0_12 = arith.constant 0 : index
    %8 = vector.load %arg6[%c0_9, %c0_10, %c0_11, %c0_12] : memref<1x4x1x8xf32, #tpu.memory_space<vmem>>, vector<1x1x1x8xf32>
    %9 = vector.shape_cast %8 : vector<1x1x1x8xf32> to vector<1x8xf32>
    %10 = vector.broadcast %9 : vector<1x8xf32> to vector<8x8xf32>
    %11 = arith.addf %7, %10 : vector<8x8xf32>
    %cst_13 = arith.constant dense<0xFF800000> : vector<8xf32>
    %12 = vector.multi_reduction <maximumf>, %11, %cst_13 [1] : vector<8x8xf32> to vector<8xf32>
    %13 = vector.shape_cast %12 : vector<8xf32> to vector<8x1xf32>
    %14 = vector.broadcast %13 : vector<8x1xf32> to vector<8x8xf32>
    %15 = arith.subf %11, %14 : vector<8x8xf32>
    %16 = math.exp %15 : vector<8x8xf32>
    %cst_14 = arith.constant dense<0.000000e+00> : vector<8xf32>
    %17 = vector.multi_reduction <add>, %16, %cst_14 [1] : vector<8x8xf32> to vector<8xf32>
    %18 = vector.shape_cast %17 : vector<8xf32> to vector<8x1xf32>
    %19 = vector.broadcast %18 : vector<8x1xf32> to vector<8x8xf32>
    %20 = arith.divf %16, %19 : vector<8x8xf32>
    %c0_15 = arith.constant 0 : index
    %c0_16 = arith.constant 0 : index
    %c0_17 = arith.constant 0 : index
    %c0_18 = arith.constant 0 : index
    %21 = vector.load %arg5[%c0_15, %c0_16, %c0_17, %c0_18] : memref<1x4x8x8xf32, #tpu.memory_space<vmem>>, vector<1x1x8x8xf32>
    %22 = vector.shape_cast %21 : vector<1x1x8x8xf32> to vector<8x8xf32>
    %cst_19 = arith.constant dense<0.000000e+00> : vector<8x8xf32>
    %23 = tpu.matmul %20, %22, %cst_19 {dimension_numbers = #tpu.dot_dimension_numbers<[1], [0], [0], [1], [0, 0, 1, 1], [], []>} : vector<8x8xf32>, vector<8x8xf32>, vector<8x8xf32> -> vector<8x8xf32>
    %c0_20 = arith.constant 0 : index
    %c0_21 = arith.constant 0 : index
    %c0_22 = arith.constant 0 : index
    %24 = vector.load %arg7[%c0_20, %c0_21, %c0_22] : memref<4x8x32xf32, #tpu.memory_space<vmem>>, vector<1x8x32xf32>
    %25 = vector.shape_cast %24 : vector<1x8x32xf32> to vector<8x32xf32>
    %cst_23 = arith.constant dense<0.000000e+00> : vector<8x32xf32>
    %26 = tpu.matmul %23, %25, %cst_23 {dimension_numbers = #tpu.dot_dimension_numbers<[1], [0], [0], [1], [0, 0, 1, 1], [], []>} : vector<8x8xf32>, vector<8x32xf32>, vector<8x32xf32> -> vector<8x32xf32>
    %27 = vector.extract_strided_slice %3 {offsets = [0, 8], sizes = [8, 8], strides = [1, 1]} : vector<8x32xf32> to vector<8x8xf32>
    %c0_24 = arith.constant 0 : index
    %c1 = arith.constant 1 : index
    %c0_25 = arith.constant 0 : index
    %c0_26 = arith.constant 0 : index
    %28 = vector.load %arg4[%c0_24, %c1, %c0_25, %c0_26] : memref<1x4x8x8xf32, #tpu.memory_space<vmem>>, vector<1x1x8x8xf32>
    %29 = vector.shape_cast %28 : vector<1x1x8x8xf32> to vector<8x8xf32>
    %cst_27 = arith.constant dense<0.000000e+00> : vector<8x8xf32>
    %30 = tpu.matmul %27, %29, %cst_27 {dimension_numbers = #tpu.dot_dimension_numbers<[1], [0], [0], [1], [0, 0, 1, 1], [], []>} : vector<8x8xf32>, vector<8x8xf32>, vector<8x8xf32> -> vector<8x8xf32>
    %c0_28 = arith.constant 0 : index
    %c1_29 = arith.constant 1 : index
    %c0_30 = arith.constant 0 : index
    %c0_31 = arith.constant 0 : index
    %31 = vector.load %arg6[%c0_28, %c1_29, %c0_30, %c0_31] : memref<1x4x1x8xf32, #tpu.memory_space<vmem>>, vector<1x1x1x8xf32>
    %32 = vector.shape_cast %31 : vector<1x1x1x8xf32> to vector<1x8xf32>
    %33 = vector.broadcast %32 : vector<1x8xf32> to vector<8x8xf32>
    %34 = arith.addf %30, %33 : vector<8x8xf32>
    %cst_32 = arith.constant dense<0xFF800000> : vector<8xf32>
    %35 = vector.multi_reduction <maximumf>, %34, %cst_32 [1] : vector<8x8xf32> to vector<8xf32>
    %36 = vector.shape_cast %35 : vector<8xf32> to vector<8x1xf32>
    %37 = vector.broadcast %36 : vector<8x1xf32> to vector<8x8xf32>
    %38 = arith.subf %34, %37 : vector<8x8xf32>
    %39 = math.exp %38 : vector<8x8xf32>
    %cst_33 = arith.constant dense<0.000000e+00> : vector<8xf32>
    %40 = vector.multi_reduction <add>, %39, %cst_33 [1] : vector<8x8xf32> to vector<8xf32>
    %41 = vector.shape_cast %40 : vector<8xf32> to vector<8x1xf32>
    %42 = vector.broadcast %41 : vector<8x1xf32> to vector<8x8xf32>
    %43 = arith.divf %39, %42 : vector<8x8xf32>
    %c0_34 = arith.constant 0 : index
    %c1_35 = arith.constant 1 : index
    %c0_36 = arith.constant 0 : index
    %c0_37 = arith.constant 0 : index
    %44 = vector.load %arg5[%c0_34, %c1_35, %c0_36, %c0_37] : memref<1x4x8x8xf32, #tpu.memory_space<vmem>>, vector<1x1x8x8xf32>
    %45 = vector.shape_cast %44 : vector<1x1x8x8xf32> to vector<8x8xf32>
    %cst_38 = arith.constant dense<0.000000e+00> : vector<8x8xf32>
    %46 = tpu.matmul %43, %45, %cst_38 {dimension_numbers = #tpu.dot_dimension_numbers<[1], [0], [0], [1], [0, 0, 1, 1], [], []>} : vector<8x8xf32>, vector<8x8xf32>, vector<8x8xf32> -> vector<8x8xf32>
    %c1_39 = arith.constant 1 : index
    %c0_40 = arith.constant 0 : index
    %c0_41 = arith.constant 0 : index
    %47 = vector.load %arg7[%c1_39, %c0_40, %c0_41] : memref<4x8x32xf32, #tpu.memory_space<vmem>>, vector<1x8x32xf32>
    %48 = vector.shape_cast %47 : vector<1x8x32xf32> to vector<8x32xf32>
    %cst_42 = arith.constant dense<0.000000e+00> : vector<8x32xf32>
    %49 = tpu.matmul %46, %48, %cst_42 {dimension_numbers = #tpu.dot_dimension_numbers<[1], [0], [0], [1], [0, 0, 1, 1], [], []>} : vector<8x8xf32>, vector<8x32xf32>, vector<8x32xf32> -> vector<8x32xf32>
    %50 = arith.addf %26, %49 : vector<8x32xf32>
    %51 = vector.extract_strided_slice %3 {offsets = [0, 16], sizes = [8, 8], strides = [1, 1]} : vector<8x32xf32> to vector<8x8xf32>
    %c0_43 = arith.constant 0 : index
    %c2 = arith.constant 2 : index
    %c0_44 = arith.constant 0 : index
    %c0_45 = arith.constant 0 : index
    %52 = vector.load %arg4[%c0_43, %c2, %c0_44, %c0_45] : memref<1x4x8x8xf32, #tpu.memory_space<vmem>>, vector<1x1x8x8xf32>
    %53 = vector.shape_cast %52 : vector<1x1x8x8xf32> to vector<8x8xf32>
    %cst_46 = arith.constant dense<0.000000e+00> : vector<8x8xf32>
    %54 = tpu.matmul %51, %53, %cst_46 {dimension_numbers = #tpu.dot_dimension_numbers<[1], [0], [0], [1], [0, 0, 1, 1], [], []>} : vector<8x8xf32>, vector<8x8xf32>, vector<8x8xf32> -> vector<8x8xf32>
    %c0_47 = arith.constant 0 : index
    %c2_48 = arith.constant 2 : index
    %c0_49 = arith.constant 0 : index
    %c0_50 = arith.constant 0 : index
    %55 = vector.load %arg6[%c0_47, %c2_48, %c0_49, %c0_50] : memref<1x4x1x8xf32, #tpu.memory_space<vmem>>, vector<1x1x1x8xf32>
    %56 = vector.shape_cast %55 : vector<1x1x1x8xf32> to vector<1x8xf32>
    %57 = vector.broadcast %56 : vector<1x8xf32> to vector<8x8xf32>
    %58 = arith.addf %54, %57 : vector<8x8xf32>
    %cst_51 = arith.constant dense<0xFF800000> : vector<8xf32>
    %59 = vector.multi_reduction <maximumf>, %58, %cst_51 [1] : vector<8x8xf32> to vector<8xf32>
    %60 = vector.shape_cast %59 : vector<8xf32> to vector<8x1xf32>
    %61 = vector.broadcast %60 : vector<8x1xf32> to vector<8x8xf32>
    %62 = arith.subf %58, %61 : vector<8x8xf32>
    %63 = math.exp %62 : vector<8x8xf32>
    %cst_52 = arith.constant dense<0.000000e+00> : vector<8xf32>
    %64 = vector.multi_reduction <add>, %63, %cst_52 [1] : vector<8x8xf32> to vector<8xf32>
    %65 = vector.shape_cast %64 : vector<8xf32> to vector<8x1xf32>
    %66 = vector.broadcast %65 : vector<8x1xf32> to vector<8x8xf32>
    %67 = arith.divf %63, %66 : vector<8x8xf32>
    %c0_53 = arith.constant 0 : index
    %c2_54 = arith.constant 2 : index
    %c0_55 = arith.constant 0 : index
    %c0_56 = arith.constant 0 : index
    %68 = vector.load %arg5[%c0_53, %c2_54, %c0_55, %c0_56] : memref<1x4x8x8xf32, #tpu.memory_space<vmem>>, vector<1x1x8x8xf32>
    %69 = vector.shape_cast %68 : vector<1x1x8x8xf32> to vector<8x8xf32>
    %cst_57 = arith.constant dense<0.000000e+00> : vector<8x8xf32>
    %70 = tpu.matmul %67, %69, %cst_57 {dimension_numbers = #tpu.dot_dimension_numbers<[1], [0], [0], [1], [0, 0, 1, 1], [], []>} : vector<8x8xf32>, vector<8x8xf32>, vector<8x8xf32> -> vector<8x8xf32>
    %c2_58 = arith.constant 2 : index
    %c0_59 = arith.constant 0 : index
    %c0_60 = arith.constant 0 : index
    %71 = vector.load %arg7[%c2_58, %c0_59, %c0_60] : memref<4x8x32xf32, #tpu.memory_space<vmem>>, vector<1x8x32xf32>
    %72 = vector.shape_cast %71 : vector<1x8x32xf32> to vector<8x32xf32>
    %cst_61 = arith.constant dense<0.000000e+00> : vector<8x32xf32>
    %73 = tpu.matmul %70, %72, %cst_61 {dimension_numbers = #tpu.dot_dimension_numbers<[1], [0], [0], [1], [0, 0, 1, 1], [], []>} : vector<8x8xf32>, vector<8x32xf32>, vector<8x32xf32> -> vector<8x32xf32>
    %74 = arith.addf %50, %73 : vector<8x32xf32>
    %75 = vector.extract_strided_slice %3 {offsets = [0, 24], sizes = [8, 8], strides = [1, 1]} : vector<8x32xf32> to vector<8x8xf32>
    %c0_62 = arith.constant 0 : index
    %c3 = arith.constant 3 : index
    %c0_63 = arith.constant 0 : index
    %c0_64 = arith.constant 0 : index
    %76 = vector.load %arg4[%c0_62, %c3, %c0_63, %c0_64] : memref<1x4x8x8xf32, #tpu.memory_space<vmem>>, vector<1x1x8x8xf32>
    %77 = vector.shape_cast %76 : vector<1x1x8x8xf32> to vector<8x8xf32>
    %cst_65 = arith.constant dense<0.000000e+00> : vector<8x8xf32>
    %78 = tpu.matmul %75, %77, %cst_65 {dimension_numbers = #tpu.dot_dimension_numbers<[1], [0], [0], [1], [0, 0, 1, 1], [], []>} : vector<8x8xf32>, vector<8x8xf32>, vector<8x8xf32> -> vector<8x8xf32>
    %c0_66 = arith.constant 0 : index
    %c3_67 = arith.constant 3 : index
    %c0_68 = arith.constant 0 : index
    %c0_69 = arith.constant 0 : index
    %79 = vector.load %arg6[%c0_66, %c3_67, %c0_68, %c0_69] : memref<1x4x1x8xf32, #tpu.memory_space<vmem>>, vector<1x1x1x8xf32>
    %80 = vector.shape_cast %79 : vector<1x1x1x8xf32> to vector<1x8xf32>
    %81 = vector.broadcast %80 : vector<1x8xf32> to vector<8x8xf32>
    %82 = arith.addf %78, %81 : vector<8x8xf32>
    %cst_70 = arith.constant dense<0xFF800000> : vector<8xf32>
    %83 = vector.multi_reduction <maximumf>, %82, %cst_70 [1] : vector<8x8xf32> to vector<8xf32>
    %84 = vector.shape_cast %83 : vector<8xf32> to vector<8x1xf32>
    %85 = vector.broadcast %84 : vector<8x1xf32> to vector<8x8xf32>
    %86 = arith.subf %82, %85 : vector<8x8xf32>
    %87 = math.exp %86 : vector<8x8xf32>
    %cst_71 = arith.constant dense<0.000000e+00> : vector<8xf32>
    %88 = vector.multi_reduction <add>, %87, %cst_71 [1] : vector<8x8xf32> to vector<8xf32>
    %89 = vector.shape_cast %88 : vector<8xf32> to vector<8x1xf32>
    %90 = vector.broadcast %89 : vector<8x1xf32> to vector<8x8xf32>
    %91 = arith.divf %87, %90 : vector<8x8xf32>
    %c0_72 = arith.constant 0 : index
    %c3_73 = arith.constant 3 : index
    %c0_74 = arith.constant 0 : index
    %c0_75 = arith.constant 0 : index
    %92 = vector.load %arg5[%c0_72, %c3_73, %c0_74, %c0_75] : memref<1x4x8x8xf32, #tpu.memory_space<vmem>>, vector<1x1x8x8xf32>
    %93 = vector.shape_cast %92 : vector<1x1x8x8xf32> to vector<8x8xf32>
    %cst_76 = arith.constant dense<0.000000e+00> : vector<8x8xf32>
    %94 = tpu.matmul %91, %93, %cst_76 {dimension_numbers = #tpu.dot_dimension_numbers<[1], [0], [0], [1], [0, 0, 1, 1], [], []>} : vector<8x8xf32>, vector<8x8xf32>, vector<8x8xf32> -> vector<8x8xf32>
    %c3_77 = arith.constant 3 : index
    %c0_78 = arith.constant 0 : index
    %c0_79 = arith.constant 0 : index
    %95 = vector.load %arg7[%c3_77, %c0_78, %c0_79] : memref<4x8x32xf32, #tpu.memory_space<vmem>>, vector<1x8x32xf32>
    %96 = vector.shape_cast %95 : vector<1x8x32xf32> to vector<8x32xf32>
    %cst_80 = arith.constant dense<0.000000e+00> : vector<8x32xf32>
    %97 = tpu.matmul %94, %96, %cst_80 {dimension_numbers = #tpu.dot_dimension_numbers<[1], [0], [0], [1], [0, 0, 1, 1], [], []>} : vector<8x8xf32>, vector<8x32xf32>, vector<8x32xf32> -> vector<8x32xf32>
    %98 = arith.addf %74, %97 : vector<8x32xf32>
    %99 = arith.addf %1, %98 : vector<8x32xf32>
    %cst_81 = arith.constant dense<0.000000e+00> : vector<8xf32>
    %100 = vector.multi_reduction <add>, %99, %cst_81 [1] : vector<8x32xf32> to vector<8xf32>
    %101 = vector.shape_cast %100 : vector<8xf32> to vector<8x1xf32>
    %cst_82 = arith.constant 3.200000e+01 : f32
    %102 = vector.broadcast %cst_82 : f32 to vector<8x1xf32>
    %103 = arith.divf %101, %102 : vector<8x1xf32>
    %104 = vector.broadcast %103 : vector<8x1xf32> to vector<8x32xf32>
    %105 = arith.subf %99, %104 : vector<8x32xf32>
    %106 = arith.mulf %105, %105 : vector<8x32xf32>
    %cst_83 = arith.constant dense<0.000000e+00> : vector<8xf32>
    %107 = vector.multi_reduction <add>, %106, %cst_83 [1] : vector<8x32xf32> to vector<8xf32>
    %108 = vector.shape_cast %107 : vector<8xf32> to vector<8x1xf32>
    %cst_84 = arith.constant 3.200000e+01 : f32
    %109 = vector.broadcast %cst_84 : f32 to vector<8x1xf32>
    %110 = arith.divf %108, %109 : vector<8x1xf32>
    %111 = vector.broadcast %103 : vector<8x1xf32> to vector<8x32xf32>
    %112 = arith.subf %99, %111 : vector<8x32xf32>
    %cst_85 = arith.constant 9.99999974E-6 : f32
    %113 = vector.broadcast %cst_85 : f32 to vector<8x1xf32>
    %114 = arith.addf %110, %113 : vector<8x1xf32>
    %115 = math.rsqrt %114 : vector<8x1xf32>
    %116 = vector.broadcast %115 : vector<8x1xf32> to vector<8x32xf32>
    %117 = arith.mulf %112, %116 : vector<8x32xf32>
    %c0_86 = arith.constant 0 : index
    %c0_87 = arith.constant 0 : index
    %118 = vector.load %arg8[%c0_86, %c0_87] : memref<1x32xf32, #tpu.memory_space<vmem>>, vector<1x32xf32>
    %119 = vector.broadcast %118 : vector<1x32xf32> to vector<8x32xf32>
    %120 = arith.mulf %117, %119 : vector<8x32xf32>
    %c0_88 = arith.constant 0 : index
    %c0_89 = arith.constant 0 : index
    %121 = vector.load %arg9[%c0_88, %c0_89] : memref<1x32xf32, #tpu.memory_space<vmem>>, vector<1x32xf32>
    %122 = vector.broadcast %121 : vector<1x32xf32> to vector<8x32xf32>
    %123 = arith.addf %120, %122 : vector<8x32xf32>
    %c0_90 = arith.constant 0 : index
    %c0_91 = arith.constant 0 : index
    %c0_92 = arith.constant 0 : index
    %124 = vector.load %arg10[%c0_90, %c0_91, %c0_92] : memref<1x8x32xf32, #tpu.memory_space<vmem>>, vector<1x8x32xf32>
    %125 = vector.shape_cast %124 : vector<1x8x32xf32> to vector<8x32xf32>
    %126 = vector.shape_cast %123 : vector<8x32xf32> to vector<1x8x32xf32>
    tpu.vector_store %arg10[%c0_90, %c0_91, %c0_92], %126 {strides = array<i32>} : memref<1x8x32xf32, #tpu.memory_space<vmem>>, vector<1x8x32xf32>,
    return
  }
  func.func @transform_0(%arg0: i32, %arg1: i32) -> (i32, i32, i32) {
    %c0_i32 = arith.constant 0 : i32
    %c0_i32_0 = arith.constant 0 : i32
    return %arg0, %arg1, %c0_i32 : i32, i32, i32
  }
  func.func @transform_1(%arg0: i32, %arg1: i32) -> (i32, i32) {
    %c0_i32 = arith.constant 0 : i32
    %c0_i32_0 = arith.constant 0 : i32
    %c0_i32_1 = arith.constant 0 : i32
    return %c0_i32, %c0_i32_0 : i32, i32
  }
  func.func @transform_2(%arg0: i32, %arg1: i32) -> (i32, i32, i32, i32) {
    %c0_i32 = arith.constant 0 : i32
    %c0_i32_0 = arith.constant 0 : i32
    %c0_i32_1 = arith.constant 0 : i32
    %c0_i32_2 = arith.constant 0 : i32
    return %arg0, %c0_i32, %c0_i32_0, %c0_i32_1 : i32, i32, i32, i32
  }
  func.func @transform_3(%arg0: i32, %arg1: i32) -> (i32, i32, i32, i32) {
    %c0_i32 = arith.constant 0 : i32
    %c0_i32_0 = arith.constant 0 : i32
    %c0_i32_1 = arith.constant 0 : i32
    %c0_i32_2 = arith.constant 0 : i32
    return %arg0, %c0_i32, %c0_i32_0, %c0_i32_1 : i32, i32, i32, i32
  }
  func.func @transform_4(%arg0: i32, %arg1: i32) -> (i32, i32, i32, i32) {
    %c0_i32 = arith.constant 0 : i32
    %c0_i32_0 = arith.constant 0 : i32
    %c0_i32_1 = arith.constant 0 : i32
    %c0_i32_2 = arith.constant 0 : i32
    return %arg0, %c0_i32, %c0_i32_0, %c0_i32_1 : i32, i32, i32, i32
  }
  func.func @transform_5(%arg0: i32, %arg1: i32) -> (i32, i32, i32) {
    %c0_i32 = arith.constant 0 : i32
    %c0_i32_0 = arith.constant 0 : i32
    %c0_i32_1 = arith.constant 0 : i32
    %c0_i32_2 = arith.constant 0 : i32
    return %c0_i32, %c0_i32_0, %c0_i32_1 : i32, i32, i32
  }
  func.func @transform_6(%arg0: i32, %arg1: i32) -> (i32, i32) {
    %c0_i32 = arith.constant 0 : i32
    %c0_i32_0 = arith.constant 0 : i32
    %c0_i32_1 = arith.constant 0 : i32
    return %c0_i32, %c0_i32_0 : i32, i32
  }
  func.func @transform_7(%arg0: i32, %arg1: i32) -> (i32, i32) {
    %c0_i32 = arith.constant 0 : i32
    %c0_i32_0 = arith.constant 0 : i32
    %c0_i32_1 = arith.constant 0 : i32
    return %c0_i32, %c0_i32_0 : i32, i32
  }
  func.func @transform_8(%arg0: i32, %arg1: i32) -> (i32, i32, i32) {
    %c0_i32 = arith.constant 0 : i32
    %c0_i32_0 = arith.constant 0 : i32
    return %arg0, %arg1, %c0_i32 : i32, i32, i32
  }
}

</mosaic_0001>

<bundles_post_ra>
// kernel: tpu_custom_call.1
= control target key start
LH: loop header
LB: loop body
LE: loop exit
PB: predicated region body
PF: predicated region fallthrough
CT: control target
= control target key end

     0   :  { %s2745_s0 = inlined_call_operand.hbm [shape: f32[2,8,32], index: 0, kind: input, shape index: {}]   ;;  %s2746_s1 = inlined_call_operand.hbm [shape: f32[32,32], index: 1, kind: input, shape index: {}]   ;;  %s2747_s2 = inlined_call_operand.hbm [shape: f32[2,4,8,8], index: 2, kind: input, shape index: {}]   ;;  %s2748_s3 = inlined_call_operand.hbm [shape: f32[2,4,8,8], index: 3, kind: input, shape index: {}]   ;;  %s2749_s4 = inlined_call_operand.vmem [shape: f32[2,4,1,8], index: 4, kind: input, shape index: {}]   ;;  %s2750_s5 = inlined_call_operand.hbm [shape: f32[4,8,32], index: 5, kind: input, shape index: {}]   ;;  %s2751_s6 = inlined_call_operand.vmem [shape: f32[1,32], index: 6, kind: input, shape index: {}]   ;;  %s2752_s7 = inlined_call_operand.vmem [shape: f32[1,32], index: 7, kind: input, shape index: {}]   ;;  %s2753_s8 = inlined_call_operand.hbm [shape: f32[2,8,32], index: 8, kind: output, shape index: {}]  }
   0x1   :  { %2768 = sst [smem:[#allocation22_spill]] %s2745_s0 }
   0x2   :  { %2769 = sst [smem:[#allocation23_spill]] %s2747_s2 }
   0x3   :  { %2770 = sst [smem:[#allocation24_spill]] %s2753_s8 }
   0x4   :  { %13 = vsyncpa [#allocation3], 0 }
   0x5   :  { %15 = vsyncpa [#allocation3 + $0x1], 0 }
   0x6   :  { %16 = vsyncpa [#allocation6], 0 }
   0x7   :  { %17 = vsyncpa [#allocation4], 0 }
   0x8   :  { %19 = vsyncpa [#allocation4 + $0x1], 0  ;;  %s2295_s27 = smov 0   ;;  %s2297_s28 = smov 0  }
   0x9   :  { %s2299_s29 = smov 0   ;;  %s2301_s30 = smov 0  }
   0xa   :  { %s2303_s9 = smov 0   ;;  %s2305_s10 = smov 0  }
   0xb LB: > { %2771 = sst [smem:[#allocation16_spill]] %s2214_s27  ;;  %s37_s11 = sadd.s32 1, %s2230_s9  ;;  %s2234_s10 = sphi %s2305_s10, %s25_s10   ;;  %s2230_s9 = sphi %s2303_s9, %s2808_s9   ;;  %s2226_s30 = sphi %s2301_s30, %s2807_s30   ;;  %s2222_s29 = sphi %s2299_s29, %s2803_s29   ;;  %s2218_s28 = sphi %s2297_s28, %s2806_s28   ;;  %s2214_s27 = sphi %s2295_s27, %s2805_s27  }
   0xc   : > { %2772 = sst [smem:[#allocation17_spill]] %s2222_s29  ;;  %s46_s12 = sadd.s32 1, %s2222_s29 }
   0xd   : > { %2773 = sst [smem:[#allocation18_spill]] %s2234_s10  ;;  %p39_p0 = scmp.ge.s32.totalorder %s37_s11, 2 }
   0xe   : > { %p2754_p1 = scmp.ne.s32.totalorder %s2222_s29, %s2218_s28  ;;  %p54_p2 = scmp.eq.s32.totalorder %s2234_s10, 0 }
   0xf   : > { %s2810_s11 = smov (%p39_p0, %s37_s11), 0  ;;  %p1914_p5 = scmp.lt.s32.totalorder %s2234_s10, 2 }
  0x10   : > { %2774 = sst [smem:[#allocation19_spill]] %s2810_s11  ;;  %p55_p4 = por %p54_p2, %p2754_p1 }
  0x11   : > { %s41_s13 = ssub.s32 %s2230_s9, %s2810_s11  ;;  %s305_s14 = sand.u32 1, %s2234_s10  }
  0x12   : > { %p44_p6 = scmp.eq.s32.totalorder %s41_s13, 0  ;;  %s307_s15 = sand.u32 1, %s2222_s29  }
  0x13   : > { %s1720_s16 = sshll.u32 %s2230_s9, 7  ;;  %s1719_s18 = sshll.u32 %s307_s15, 3 }
  0x14   : > { %s2343_s17 = scalar_select %p44_p6, %s2222_s29, %s46_s12  }
  0x15   : > { %s2776_s0 = sld [smem:[#allocation22_spill]]  ;;  %p2350_p7 = pnand %p1914_p5, %p55_p4 }
  0x16   : > { %2775 = sst [smem:[#allocation20_spill]] %s2343_s17  ;;  %s309_s23 = scalar_lea.vmem [#allocation2], %s1719_s18 }
  0x17   : > { %s317_s24 = sshll.u32 %s309_s23, 4  ;;  %s2354_s25 = sshll.u32 %s307_s15, 5  ;;  %s2356_s24 = int_to_ptr.vmem [resolvable:$true] %s317_s24 }
  0x18   : > { %s2358_s26 = scalar_lea.sflag [#allocation3], %s305_s14  ;;  %p2364_p9 = pneg %p2350_p7 }
  0x1b   : > { %s2348_s21 = scalar_lea.hbm %s2776_s0, %s1720_s16  ;;  %s1999_s15 = scalar_lea.hbm %s2776_s0, 256 }
  0x1c   : > { %s1994_s12 = scalar_lea.hbm %s2348_s21, 128  ;;  %p2000_p12 = scmp.lt.u32.totalorder %s2348_s21, %s2776_s0 }
  0x1d   : > { %p1995_p8 = scmp.ne.s32.totalorder %s2348_s21, %s1994_s12  ;;  %p2001_p13 = scmp.lt.u32.totalorder %s1999_s15, %s1994_s12 }
  0x1e   : > { %p2003_p2 = scmp.lt.u32.totalorder %s1994_s12, %s2348_s21 }
  0x1f   : > { %p1997_p10 = pnand %p2364_p9, %p1995_p8  ;;  %p2002_p0 = por %p2001_p13, %p2000_p12 }
  0x21   : > { %p1998_p11 = pneg %p1997_p10  ;;  %p2004_p4 = por %p2003_p2, %p2002_p0 }
  0x23   : > { %p2005_p5 = pnand %p2004_p4, %p1998_p11 }
  0x25   : > { %2008 = shalt.err (!%p2005_p5)
}
  0x26   : > { %s2009_s14 = scalar_lea.vmem %s2356_s24, 128  ;;  %s2236_s23 = smov [#allocation2]  }
  0x27   : > { %p2010_p6 = scmp.ne.s32.totalorder %s2356_s24, %s2009_s14  ;;  %s2014_s16 = sshll.u32 %s2236_s23, 4  ;;  %s2015_s16 = int_to_ptr.vmem [resolvable:$false] %s2014_s16 }
  0x28   : > { %s2016_s18 = scalar_lea.vmem %s2015_s16, 256  ;;  %p2017_p3 = scmp.lt.s32.totalorder %s2356_s24, %s2015_s16 }
  0x29   : > { %p2012_p8 = pnand %p2010_p6, %p2364_p9  ;;  %p2018_p1 = scmp.lt.s32.totalorder %s2016_s18, %s2009_s14 }
  0x2b   : > { %p2013_p10 = pneg %p2012_p8  ;;  %p2019_p12 = por %p2018_p1, %p2017_p3 }
  0x2d   : > { %p2020_p13 = pnand %p2019_p12, %p2013_p10 }
  0x2f   : > { %2023 = shalt.err (!%p2020_p13)
}
  0x30   : > { %1901 = dma.hbm_to_vmem [thread:$0]  (!%p2350_p7), %s2348_s21, 128, %s2356_s24, %s2358_s26  }
  0x31   : > { %s2759_s12 = sshll.u32 %s2230_s9, 9  ;;  %s328_s15 = scalar_lea.vmem [#allocation7], %s2354_s25 }
  0x32   : > { %s335_s19 = sshll.u32 %s328_s15, 4  ;;  %s349_s20 = scalar_lea.vmem [#allocation8], %s2354_s25  ;;  %s2390_s19 = int_to_ptr.vmem [resolvable:$true] %s335_s19 }
  0x33   : > { %s356_s14 = sshll.u32 %s349_s20, 4  ;;  %s2396_s23 = sadd.s32 4294967295, %s2234_s10   ;;  %s2393_s14 = int_to_ptr.vmem [resolvable:$true] %s356_s14 }
  0x34   : > { %s1714_s16 = sadd.s32 4294967294, %s2234_s10   ;;  %p59_p1 = scmp.ne.s32.totalorder %s2218_s28, %s2214_s27 }
  0x35   : > { %p2762_p3 = scmp.eq.s32.totalorder %s2396_s23, 0  ;;  %p247_p11 = scmp.eq.s32.totalorder %s2396_s23, 1 }
  0x36   : > { %p253_p0 = scmp.eq.s32.totalorder %s1714_s16, 1  ;;  %p1715_p2 = scmp.ge.s32.totalorder %s2234_s10, 1 }
  0x37   : > { %p2406_p4 = por %p2762_p3, %p59_p1  ;;  %p2780_p5 = scmp.ne.s32.totalorder %s2222_s29, %s2218_s28 }
  0x38   : > { %p2417_p8 = por %p253_p0, %p59_p1  ;;  %p260_p10 = scmp.lt.s32.totalorder %s2234_s10, 3 }
  0x39   : > { %s2779_s21 = scalar_select %p2406_p4, 1, 0 }
  0x3a   : > { %p2413_p6 = por %p247_p11, %p2780_p5  ;;  %p2422_p12 = pnand %p1715_p2, %p260_p10 }
  0x3b   : > { %s2782_s25 = scalar_select %p2417_p8, 1, 0 }
  0x3c   : > { %s2781_s24 = scalar_select %p2413_p6, 1, 0 }
  0x3d   : > { %2783 = sst [smem:[#allocation21_spill]] %s2782_s25  ;;  %s2237_s15 = smov [#allocation5]  }
  0x3e   : > { %s2784_s18 = scalar_select %p2422_p12, 1, 0 }
  0x3f   : > { %s272_s20 = sshll.u32 %s2237_s15, 4  ;;  %p1891_p13 = pneg %p2422_p12  ;;  %s2426_s20 = int_to_ptr.vmem [resolvable:$true] %s272_s20 }
  0x40   : > { %s2785_s2 = sld [smem:[#allocation23_spill]]  ;;  %s2238_s15 = smov [#allocation9]  }
  0x41   : > { %p2439_p1 = pnand %p1891_p13, %p2762_p3  ;;  %s2443_s29 = sshll.u32 %s2238_s15, 4  ;;  %s2471_s29 = int_to_ptr.vmem [resolvable:$true] %s2443_s29 }
  0x43   : > { %s2786_s17 = scalar_select %p2439_p1, 1, 0 }
  0x46   : > { %s2435_s11 = scalar_lea.hbm %s2785_s2, %s2759_s12  ;;  %s2029_s12 = scalar_lea.hbm %s2785_s2, 1024 }
  0x47   : > { %s2024_s10 = scalar_lea.hbm %s2435_s11, 512  ;;  %p2030_p5 = scmp.lt.u32.totalorder %s2435_s11, %s2785_s2 }
  0x48   : > { %p2025_p11 = scmp.ne.s32.totalorder %s2435_s11, %s2024_s10  ;;  %p2031_p10 = scmp.lt.u32.totalorder %s2029_s12, %s2024_s10 }
  0x49   : > { %p2033_p3 = scmp.lt.u32.totalorder %s2024_s10, %s2435_s11 }
  0x4a   : > { %p2027_p0 = pnand %p2025_p11, %p2364_p9  ;;  %p2032_p13 = por %p2031_p10, %p2030_p5 }
  0x4c   : > { %p2028_p2 = pneg %p2027_p0  ;;  %p2034_p8 = por %p2033_p3, %p2032_p13 }
  0x4e   : > { %p2035_p6 = pnand %p2034_p8, %p2028_p2 }
  0x50   : > { %2038 = shalt.err (!%p2035_p6)
}
  0x51   : > { %s2039_s15 = scalar_lea.vmem %s2390_s19, 512  ;;  %s2239_s0 = smov [#allocation7]  }
  0x52   : > { %p2040_p11 = scmp.ne.s32.totalorder %s2390_s19, %s2039_s15  ;;  %s2044_s16 = sshll.u32 %s2239_s0, 4  ;;  %s2045_s16 = int_to_ptr.vmem [resolvable:$false] %s2044_s16 }
  0x53   : > { %s2046_s27 = scalar_lea.vmem %s2045_s16, 1024  ;;  %p2047_p12 = scmp.lt.s32.totalorder %s2390_s19, %s2045_s16 }
  0x54   : > { %p2042_p0 = pnand %p2040_p11, %p2364_p9  ;;  %p2048_p1 = scmp.lt.s32.totalorder %s2046_s27, %s2039_s15 }
  0x56   : > { %p2043_p4 = pneg %p2042_p0  ;;  %p2049_p5 = por %p2048_p1, %p2047_p12 }
  0x58   : > { %p2050_p10 = pnand %p2049_p5, %p2043_p4 }
  0x5a   : > { %2053 = shalt.err (!%p2050_p10)
}
  0x5b   : > { %s2240_s10 = smov 128   ;;  %s2241_s12 = smov 8  }
  0x5c   : > { %1904 = dma.hbm_to_vmem [thread:$0]  (!%p2350_p7), %s2435_s11, 512, %s2390_s19, %s2358_s26, %s2240_s10, %s2240_s10, %s2241_s12  }
  0x5d   : > { %s2054_s0 = scalar_lea.hbm %s2746_s1, 512  ;;  %p2787_p4 = scmp.ne.s32.totalorder %s2786_s17, 0 }
  0x5e   : > { %p2055_p3 = scmp.ne.s32.totalorder %s2746_s1, %s2054_s0  ;;  %p2061_p1 = scmp.lt.u32.totalorder %s2054_s0, %s2746_s1 }
  0x5f   : > { %p2056_p6 = pneg %p2787_p4 }
  0x61   : > { %p2057_p8 = pnand %p2056_p6, %p2055_p3 }
  0x63   : > { %p2058_p12 = pneg %p2057_p8 }
  0x65   : > { %p2063_p2 = pnand %p2061_p1, %p2058_p12 }
  0x67   : > { %2066 = shalt.err (!%p2063_p2)
}
  0x68   : > { %s2067_s11 = scalar_lea.vmem %s2426_s20, 512  ;;  %p2075_p5 = scmp.lt.s32.totalorder %s2426_s20, %s2426_s20 }
  0x69   : > { %p2068_p13 = scmp.ne.s32.totalorder %s2426_s20, %s2067_s11  ;;  %p2076_p10 = scmp.lt.s32.totalorder %s2067_s11, %s2067_s11 }
  0x6b   : > { %p2070_p11 = pnand %p2068_p13, %p2056_p6  ;;  %p2077_p3 = por %p2076_p10, %p2075_p5 }
  0x6d   : > { %p2071_p0 = pneg %p2070_p11 }
  0x6f   : > { %p2078_p8 = pnand %p2077_p3, %p2071_p0 }
  0x71   : > { %2081 = shalt.err (!%p2078_p8)
}
  0x72   : > { %1894 = dma.hbm_to_vmem [thread:$0]  (!%p2787_p4), %s2746_s1, 512, %s2426_s20, [#allocation6], %s2240_s10, %s2240_s10, %s2241_s12  }
  0x73   : > { %s2082_s15 = scalar_lea.hbm %s2750_s5, 512 }
  0x74   : > { %p2083_p12 = scmp.ne.s32.totalorder %s2750_s5, %s2082_s15  ;;  %p2089_p13 = scmp.lt.u32.totalorder %s2082_s15, %s2750_s5 }
  0x76   : > { %p2085_p1 = pnand %p2083_p12, %p2056_p6 }
  0x78   : > { %p2086_p2 = pneg %p2085_p1 }
  0x7a   : > { %p2091_p11 = pnand %p2089_p13, %p2086_p2 }
  0x7c   : > { %2094 = shalt.err (!%p2091_p11)
}
  0x7d   : > { %s2095_s20 = scalar_lea.vmem %s2471_s29, 512  ;;  %p2103_p3 = scmp.lt.s32.totalorder %s2471_s29, %s2471_s29 }
  0x7e   : > { %p2096_p0 = scmp.ne.s32.totalorder %s2471_s29, %s2095_s20  ;;  %p2104_p8 = scmp.lt.s32.totalorder %s2095_s20, %s2095_s20 }
  0x80   : > { %p2098_p5 = pnand %p2096_p0, %p2056_p6  ;;  %p2105_p12 = por %p2104_p8, %p2103_p3 }
  0x82   : > { %p2099_p10 = pneg %p2098_p5 }
  0x84   : > { %p2106_p1 = pnand %p2105_p12, %p2099_p10 }
  0x86   : > { %2109 = shalt.err (!%p2106_p1)
}
  0x87   : > { %1897 = dma.hbm_to_vmem [thread:$0]  (!%p2787_p4), %s2750_s5, 512, %s2471_s29, [#allocation6], %s2240_s10, %s2240_s10, %s2241_s12  }
  0x88   : > { %s2788_s19 = sshll.u32 %s2230_s9, 9  ;;  %s2115_s11 = scalar_lea.hbm %s2748_s3, 1024 }
  0x89   : > { %s2536_s0 = scalar_lea.hbm %s2748_s3, %s2788_s19 }
  0x8a   : > { %s2110_s17 = scalar_lea.hbm %s2536_s0, 512  ;;  %p2116_p4 = scmp.lt.u32.totalorder %s2536_s0, %s2748_s3 }
  0x8b   : > { %p2111_p6 = scmp.ne.s32.totalorder %s2536_s0, %s2110_s17  ;;  %p2117_p11 = scmp.lt.u32.totalorder %s2115_s11, %s2110_s17 }
  0x8c   : > { %p2119_p5 = scmp.lt.u32.totalorder %s2110_s17, %s2536_s0 }
  0x8d   : > { %p2113_p2 = pnand %p2111_p6, %p2364_p9  ;;  %p2118_p0 = por %p2117_p11, %p2116_p4 }
  0x8f   : > { %p2114_p13 = pneg %p2113_p2  ;;  %p2120_p10 = por %p2119_p5, %p2118_p0 }
  0x91   : > { %p2121_p3 = pnand %p2120_p10, %p2114_p13 }
  0x93   : > { %2124 = shalt.err (!%p2121_p3)
}
  0x94   : > { %s2125_s2 = scalar_lea.vmem %s2393_s14, 512  ;;  %s2242_s8 = smov [#allocation8]  }
  0x95   : > { %p2126_p8 = scmp.ne.s32.totalorder %s2393_s14, %s2125_s2  ;;  %s2130_s19 = sshll.u32 %s2242_s8, 4  ;;  %s2131_s19 = int_to_ptr.vmem [resolvable:$false] %s2130_s19 }
  0x96   : > { %s2132_s25 = scalar_lea.vmem %s2131_s19, 1024  ;;  %p2133_p6 = scmp.lt.s32.totalorder %s2393_s14, %s2131_s19 }
  0x97   : > { %p2128_p12 = pnand %p2126_p8, %p2364_p9  ;;  %p2134_p2 = scmp.lt.s32.totalorder %s2132_s25, %s2125_s2 }
  0x99   : > { %p2129_p1 = pneg %p2128_p12  ;;  %p2135_p4 = por %p2134_p2, %p2133_p6 }
  0x9b   : > { %p2136_p11 = pnand %p2135_p4, %p2129_p1 }
  0x9d   : > { %2139 = shalt.err (!%p2136_p11)
}
  0x9e   : > { %1907 = dma.hbm_to_vmem [thread:$0]  (!%p2350_p7), %s2536_s0, 512, %s2393_s14, %s2358_s26, %s2240_s10, %s2240_s10, %s2241_s12  }
  0x9f   : > { %p2789_p9 = scmp.ne.s32.totalorder %s2784_s18, 0 }
  0xa0   : > { %s377_s13 = sand.u32 (!%p2789_p9), 1, %s2396_s23   ;;  %s2567_s15 = sand.u32 (!%p2789_p9), 1, %s2218_s28  }
  0xa1   : > { %375 = sbr.rel (%p2789_p9) target bundleno = 3492 (0xda4), region = 52  ;;  %s1728_s17 = sshll.u32 (!%p2789_p9), %s2567_s15, 3 }
  0xa2   : > { %s378_s22 = scalar_lea.sflag (!%p2789_p9), [#allocation3], %s377_s13  ;;  %s381_s16 = scalar_lea.vmem (!%p2789_p9), [#allocation2], %s1728_s17 }
  0xa3   : > { %p2790_p13 = scmp.ne.s32.totalorder (!%p2789_p9), %s2779_s21, 0 }
  0xa8   : > { %2193 = dma.done.wait (%p2790_p13), %s378_s22, 128  }
  0xa9   : > { %2195 = vsyncadd (%p2790_p13), %s378_s22, 4294967168  ;;  %p2791_p7 = scmp.eq.s32.totalorder %s2396_s23, 0 }
  0xab   : > { %2197 = dma.done.wait (%p2791_p7), [#allocation6], 512   ;;  %p2792_p0 = pmov %p2791_p7 }
  0xac   : > { %s1730_s26 = sshll.u32 %s2567_s15, 5 }
  0xad   : > { %2199 = vsyncadd (%p2792_p0), [#allocation6], 4294966784  ;;  %s2581_s14 = scalar_lea.vmem [#allocation7], %s1730_s26 }
  0xae   : > { %2201 = dma.done.wait (%p2790_p13), %s378_s22, 1024  }
  0xaf   : > { %2203 = vsyncadd (%p2790_p13), %s378_s22, 4294966272  ;;  %s2587_s18 = scalar_lea.vmem [#allocation8], %s1730_s26  ;;  %p2793_p5 = pmov %p2792_p0 }
  0xb0   : > { %p2794_p10 = pmov %p2792_p0 }
  0xb1   : > { %2205 = dma.done.wait (%p2793_p5), [#allocation6], 512  }
  0xb2   : > { %2207 = vsyncadd (%p2794_p10), [#allocation6], 4294966784  ;;  %v2243_v0 = vmov 0.0|0.0   ;;  %vm2244_vm0 = vmmov 0   ;;  %v2245_v1 = vmov 0.0   ;;  %v459_v2 = vld [vmem:[#allocation5] sm:$0xff] }
  0xb3   : > { %1869 = vmatprep.subr.bf16.mxu0 %v2243_v0  ;;  %1806 = vmatprep.mubr.msk.f32.mxu0 %vm2244_vm0, %v2245_v1  ;;  %v460_v3 = vld [vmem:[#allocation5 + $0x8] sm:$0xff]  ;;  %v461_v4 = vld [vmem:[#allocation5 + $0x10] sm:$0xff]  ;;  %v462_v6 = vld [vmem:[#allocation5 + $0x18] sm:$0xff]  ;;  %vm463_vm1 = vcmask 261120   ;;  %vm545_vm2 = vcmask 64512   ;;  %s2246_s23 = smov 120  }
  0xb4   : > { %1809 = vmatprep.subr.mxu1 %v2245_v1  ;;  %1811 = vmatprep.mubr.msk.f32.mxu1 %vm2244_vm0, %v2245_v1  ;;  %v1870_v5 = vpack.c.bf16 %v460_v3, %v459_v2  ;;  %v1873_v7 = vpack.c.bf16 %v462_v6, %v461_v4  ;;  %v2598_v8 = vld [vmem:[%s381_s16] sm:$0xff]  ;;  %v537_v9 = vld [vmem:[%s2581_s14] sm:$0xff]  ;;  %p454_p3 = scmp.lt.s32.totalorder %s2226_s30, 1  ;;  %v1739_v26 = vld [vmem:[%s2581_s14 + $0x8] sm:$0xff]  ;;  %s2247_s11 = smov 112  }
  0xb5   : > { %1810 = vmatpush3.msra.mxu1 %v537_v9  ;;  %v630_v22 = vld [vmem:[%s2587_s18] sm:$0xff]  ;;  %v1743_v40 = vld [vmem:[%s2587_s18 + $0x8] sm:$0xff]  ;;  %v1747_v46 = vld [vmem:[%s2581_s14 + $0x10] sm:$0xff]  ;;  %s2248_s29 = smov 104   ;;  %s1764_s25 = sshll.u32 %s2226_s30, 7 }
  0xb6   : > { %1871 = vmatpush3.bf16.msra.mxu0 %v1870_v5  ;;  %1814 = vmatprep.subr.mxu1 %v2245_v1  ;;  %s455_s21 = scalar_select %p454_p3, %s2226_s30, 1  ;;  %v876_v41 = vld [vmem:[#allocation9 + $0x8] sm:$0xff]  ;;  %v704_v45 = vld [vmem:[#allocation9] sm:$0xff]  ;;  %v1751_v2 = vld [vmem:[%s2587_s18 + $0x10] sm:$0xff] }
  0xb7   : > { %1872 = vmatprep.subr.bf16.mxu0 %v2243_v0  ;;  %v1754_v6 = vld [vmem:[%s2581_s14 + $0x18] sm:$0xff]  ;;  %v1194_v9 = vld [vmem:[#allocation9 + $0x10] sm:$0xff]  ;;  %s453_s13 = scalar_lea.vmem [#allocation10], %s1728_s17  ;;  %s2795_s14 = sld [smem:[#allocation24_spill]] }
  0xb8   : > { %s1734_s10 = sshll.u32 %s455_s21, 2  ;;  %s1562_s22 = sshll.u32 %s453_s13, 4  ;;  %s2697_s22 = int_to_ptr.vmem [resolvable:$true] %s1562_s22 }
  0xb9   : > { %s2619_s27 = scalar_lea.vmem %s2749_s4, %s1734_s10  ;;  %s2140_s21 = scalar_lea.vmem %s2697_s22, 128 }
  0xba   : > { %1874 = vmatpush3.bf16.msra.mxu0 %v1873_v7  ;;  %v1736_v12 = vld [vmem:[%s2619_s27] ss:$0 sm:$0xff]  ;;  %v1741_v30 = vld [vmem:[%s2619_s27 + $0x1] ss:$0 sm:$0xff]  ;;  %v1749_v55 = vld [vmem:[%s2619_s27 + $0x2] ss:$0 sm:$0xff]  ;;  %p2141_p8 = scmp.ne.s32.totalorder %s2697_s22, %s2140_s21 }
  0xbb   : > { %1824 = vmatprep.subr.mxu0 %v2245_v1  ;;  %p2796_p12 = scmp.ne.s32.totalorder %s2781_s24, 0  ;;  %s2249_s30 = smov [#allocation10]  }
  0xbc   : > { %s2144_s17 = sshll.u32 %s2249_s30, 4  ;;  %s2145_s17 = int_to_ptr.vmem [resolvable:$false] %s2144_s17 }
  0xbd   : > { %1807 = vmatmul.mubr.msk.f32.vlgmr.msra.gmra.mrb[0].mxu0 %vm463_vm1, %v2598_v8  ;;  %p2142_p1 = pnand %p2141_p8, %p2796_p12  ;;  %s2146_s10 = scalar_lea.vmem %s2145_s17, 256 }
  0xbe   : > { %1826 = vmatprep.mubr.msk.f32.mxu0 %vm2244_vm0, %v2245_v1  ;;  %1825 = vmatpush3.msra.mxu0 %v1743_v40  ;;  %p2147_p2 = scmp.lt.s32.totalorder %s2697_s22, %s2145_s17  ;;  %p2148_p4 = scmp.lt.s32.totalorder %s2146_s10, %s2140_s21 }
  0xbf   : > { %1834 = vmatprep.subr.mxu0 %v2245_v1  ;;  %p2143_p6 = pneg %p2142_p1 }
  0xc0   : > { %p2149_p11 = por %p2148_p4, %p2147_p2 }
  0xc2   : > { %p2150_p9 = pnand %p2149_p11, %p2143_p6 }
 0x190   : > { %v2607_v10 = vpop.f32.mrb[0].mxu0 }
 0x191   : > { %715 = vrot.lane.b32.xlu1 %v2607_v10, %s2246_s23  ;;  %v1808_v11 = vpop.f32.mrb[1].mxu0  ;;  %1812 = vmatmul.mubr.msk.f32.vlgmr.msra.gmra.mrb[0].mxu1 %vm545_vm2, %v2607_v10  ;;  %s1548_s23 = scalar_lea.sflag [#allocation4], %s2567_s15 }
 0x192   : > { %1816 = vmatprep.mubr.msk.f32.mxu1 %vm2244_vm0, %v2245_v1  ;;  %1815 = vmatpush3.msra.mxu1 %v630_v22  ;;  %v1758_v22 = vld [vmem:[%s2587_s18 + $0x18] sm:$0xff]  ;;  %s2695_s18 = scalar_lea.hbm %s2795_s14, %s1764_s25 }
 0x193   : > { %1819 = vmatprep.subr.mxu1 %v2245_v1 }
 0x203   : > { %v716_v27 = vpop.permute.xlu1 %715 }
 0x264   : > { %v615_v13 = vpop.f32.mrb[0].mxu1 }
 0x265   : > { %v616_v14 = vadd.f32 %v1736_v12, %v615_v13  ;;  %v1813_v15 = vpop.f32.mrb[1].mxu1  ;;  %v1756_v12 = vld [vmem:[%s2619_s27 + $0x3] ss:$0 sm:$0xff] }
 0x267   : > { %v619_v16 = vsel %vm545_vm2, %v616_v14, -inf }
 0x268   : > { %620 = vmax.xlane.f32.xlu0 %v619_v16 }
 0x2f5   : > { %v621_v17 = vpop.xlane.xlu0 %620 }
 0x2f6   : > { %v622_v18 = vsub.f32 %v616_v14, %v621_v17 }
 0x2f8   : > { %v623_v19 = vmul.f32 1.442695, %v622_v18 }
 0x2fa   : > { %1976 = vpow2.f32 %v623_v19 }
 0x304   : > { %v1977_v20 = vpop.eup %1976 }
 0x305   : > { %v625_v21 = vsel %vm545_vm2, %v1977_v20, 0.0 }
 0x306   : > { %626 = vadd.xlane.f32.xlu0 %v625_v21 }
 0x393   : > { %v627_v23 = vpop.xlane.xlu0 %626 }
 0x394   : > { %1978 = vrcp.f32 %v627_v23  ;;  %v1440_v23 = vld [vmem:[#allocation9 + $0x18] sm:$0xff] }
 0x39e   : > { %v1979_v24 = vpop.eup %1978 }
 0x39f   : > { %v629_v25 = vmul.f32 %v1979_v24, %v1977_v20 }
 0x3a1   : > { %1817 = vmatmul.mubr.msk.f32.vlgmr.msra.gmra.mrb[2].mxu1 %vm545_vm2, %v629_v25 }
 0x3a2   : > { %1820 = vmatpush3.msra.mxu1 %v1739_v26  ;;  %1821 = vmatprep.mubr.msk.f32.mxu1 %vm2244_vm0, %v2245_v1 }
 0x3a3   : > { %1829 = vmatprep.subr.mxu1 %v2245_v1 }
 0x3a5   : > { %1822 = vmatmul.mubr.msk.f32.vlgmr.msra.gmra.mrb[4].mxu1 %vm545_vm2, %v716_v27 }
 0x3a6   : > { %1831 = vmatprep.mubr.msk.f32.mxu1 %vm2244_vm0, %v2245_v1  ;;  %1830 = vmatpush3.msra.mxu1 %v876_v41 }
 0x3a7   : > { %1839 = vmatprep.subr.mxu1 %v2245_v1 }
 0x474   : > { %v700_v28 = vpop.f32.mrb[2].mxu1 }
 0x475   : > { %v1818_v29 = vpop.f32.mrb[3].mxu1 }
 0x478   : > { %v785_v31 = vpop.f32.mrb[4].mxu1 }
 0x479   : > { %v786_v32 = vadd.f32 %v1741_v30, %v785_v31  ;;  %v1823_v33 = vpop.f32.mrb[5].mxu1 }
 0x47b   : > { %v789_v34 = vsel %vm545_vm2, %v786_v32, -inf }
 0x47c   : > { %790 = vmax.xlane.f32.xlu1 %v789_v34 }
 0x509   : > { %v791_v35 = vpop.xlane.xlu1 %790 }
 0x50a   : > { %v792_v36 = vsub.f32 %v786_v32, %v791_v35 }
 0x50c   : > { %v793_v37 = vmul.f32 1.442695, %v792_v36 }
 0x50e   : > { %1980 = vpow2.f32 %v793_v37 }
 0x518   : > { %v1981_v38 = vpop.eup %1980 }
 0x519   : > { %v795_v39 = vsel %vm545_vm2, %v1981_v38, 0.0 }
 0x51a   : > { %796 = vadd.xlane.f32.xlu0 %v795_v39 }
 0x530   : > { %1033 = vrot.lane.b32.xlu0 %v2607_v10, %s2247_s11 }
 0x5a7   : > { %v797_v42 = vpop.xlane.xlu0 %796 }
 0x5a8   : > { %1982 = vrcp.f32 %v797_v42 }
 0x5ab   : > { %v1034_v49 = vpop.permute.xlu0 %1033 }
 0x5b2   : > { %v1983_v43 = vpop.eup %1982 }
 0x5b3   : > { %v799_v44 = vmul.f32 %v1983_v43, %v1981_v38 }
 0x5b5   : > { %1827 = vmatmul.mubr.msk.f32.vlgmr.msra.gmra.mrb[2].mxu0 %vm545_vm2, %v799_v44 }
 0x5b6   : > { %1835 = vmatpush3.msra.mxu0 %v704_v45  ;;  %1836 = vmatprep.mubr.msk.f32.mxu0 %vm2244_vm0, %v2245_v1 }
 0x5b7   : > { %1844 = vmatprep.subr.mxu0 %v2245_v1 }
 0x5b9   : > { %1837 = vmatmul.mubr.msk.f32.vlgmr.msra.gmra.mrb[4].mxu0 %vm545_vm2, %v700_v28 }
 0x5ba   : > { %1846 = vmatprep.mubr.msk.f32.mxu0 %vm2244_vm0, %v2245_v1  ;;  %1845 = vmatpush3.msra.mxu0 %v1751_v2 }
 0x5bb   : > { %1854 = vmatprep.subr.mxu0 %v2245_v1 }
 0x688   : > { %v871_v47 = vpop.f32.mrb[2].mxu0 }
 0x689   : > { %v1828_v48 = vpop.f32.mrb[3].mxu0  ;;  %1832 = vmatmul.mubr.msk.f32.vlgmr.msra.gmra.mrb[6].mxu1 %vm545_vm2, %v871_v47 }
 0x68a   : > { %1840 = vmatpush3.msra.mxu1 %v1747_v46  ;;  %1841 = vmatprep.mubr.msk.f32.mxu1 %vm2244_vm0, %v2245_v1  ;;  %v1762_v46 = vld [vmem:[%s2752_s7] ss:$0 sm:$0xff] }
 0x68b   : > { %1849 = vmatprep.subr.mxu1 %v2245_v1 }
 0x68c   : > { %v1019_v50 = vpop.f32.mrb[4].mxu0 }
 0x68d   : > { %v1838_v51 = vpop.f32.mrb[5].mxu0  ;;  %1842 = vmatmul.mubr.msk.f32.vlgmr.msra.gmra.mrb[8].mxu1 %vm545_vm2, %v1034_v49 }
 0x68e   : > { %1851 = vmatprep.mubr.msk.f32.mxu1 %vm2244_vm0, %v2245_v1  ;;  %1850 = vmatpush3.msra.mxu1 %v1194_v9 }
 0x68f   : > { %1859 = vmatprep.subr.mxu1 %v2245_v1 }
 0x75c   : > { %v946_v52 = vpop.f32.mrb[6].mxu1 }
 0x75d   : > { %v1020_v53 = vadd.f32 %v1019_v50, %v946_v52  ;;  %v1833_v54 = vpop.f32.mrb[7].mxu1 }
 0x760   : > { %v1103_v56 = vpop.f32.mrb[8].mxu1 }
 0x761   : > { %v1104_v57 = vadd.f32 %v1749_v55, %v1103_v56  ;;  %v1843_v58 = vpop.f32.mrb[9].mxu1 }
 0x763   : > { %v1107_v59 = vsel %vm545_vm2, %v1104_v57, -inf }
 0x764   : > { %1108 = vmax.xlane.f32.xlu0 %v1107_v59 }
 0x7f1   : > { %v1109_v60 = vpop.xlane.xlu0 %1108 }
 0x7f2   : > { %v1110_v61 = vsub.f32 %v1104_v57, %v1109_v60 }
 0x7f4   : > { %v1111_v62 = vmul.f32 1.442695, %v1110_v61 }
 0x7f6   : > { %1984 = vpow2.f32 %v1111_v62 }
 0x800   : > { %v1985_v63 = vpop.eup %1984 }
 0x801   : > { %v1113_v0 = vsel %vm545_vm2, %v1985_v63, 0.0 }
 0x802   : > { %1114 = vadd.xlane.f32.xlu1 %v1113_v0 }
 0x813   : > { %1279 = vrot.lane.b32.xlu1 %v2607_v10, %s2248_s29 }
 0x88f   : > { %v1115_v3 = vpop.xlane.xlu1 %1114 }
 0x890   : > { %1986 = vrcp.f32 %v1115_v3 }
 0x893   : > { %v1280_v7 = vpop.permute.xlu1 %1279 }
 0x89a   : > { %v1987_v4 = vpop.eup %1986 }
 0x89b   : > { %v1117_v5 = vmul.f32 %v1987_v4, %v1985_v63 }
 0x89d   : > { %1847 = vmatmul.mubr.msk.f32.vlgmr.msra.gmra.mrb[6].mxu0 %vm545_vm2, %v1117_v5 }
 0x89e   : > { %1855 = vmatpush3.msra.mxu0 %v1754_v6  ;;  %1856 = vmatprep.mubr.msk.f32.mxu0 %vm2244_vm0, %v2245_v1 }
 0x89f   : > { %1864 = vmatprep.subr.mxu0 %v2245_v1 }
 0x8a1   : > { %1857 = vmatmul.mubr.msk.f32.vlgmr.msra.gmra.mrb[8].mxu0 %vm545_vm2, %v1280_v7 }
 0x8a2   : > { %1866 = vmatprep.mubr.msk.f32.mxu0 %vm2244_vm0, %v2245_v1  ;;  %1865 = vmatpush3.msra.mxu0 %v1440_v23 }
 0x970   : > { %v1189_v10 = vpop.f32.mrb[6].mxu0 }
 0x971   : > { %v1848_v11 = vpop.f32.mrb[7].mxu0  ;;  %1852 = vmatmul.mubr.msk.f32.vlgmr.msra.gmra.mrb[10].mxu1 %vm545_vm2, %v1189_v10 }
 0x972   : > { %1861 = vmatprep.mubr.msk.f32.mxu1 %vm2244_vm0, %v2245_v1  ;;  %1860 = vmatpush3.msra.mxu1 %v1758_v22 }
 0x974   : > { %v1349_v13 = vpop.f32.mrb[8].mxu0 }
 0x975   : > { %v1350_v14 = vadd.f32 %v1756_v12, %v1349_v13  ;;  %v1858_v15 = vpop.f32.mrb[9].mxu0 }
 0x977   : > { %v1353_v16 = vsel %vm545_vm2, %v1350_v14, -inf }
 0x978   : > { %1354 = vmax.xlane.f32.xlu1 %v1353_v16 }
 0xa05   : > { %v1355_v17 = vpop.xlane.xlu1 %1354 }
 0xa06   : > { %v1356_v18 = vsub.f32 %v1350_v14, %v1355_v17 }
 0xa08   : > { %v1357_v19 = vmul.f32 1.442695, %v1356_v18 }
 0xa0a   : > { %1988 = vpow2.f32 %v1357_v19 }
 0xa14   : > { %v1989_v20 = vpop.eup %1988 }
 0xa15   : > { %v1359_v21 = vsel %vm545_vm2, %v1989_v20, 0.0 }
 0xa16   : > { %1360 = vadd.xlane.f32.xlu0 %v1359_v21 }
 0xa44   : > { %v1264_v24 = vpop.f32.mrb[10].mxu1 }
 0xa45   : > { %v1268_v1 = vadd.f32 %v1264_v24, %v1020_v53  ;;  %v1853_v25 = vpop.f32.mrb[11].mxu1 }
 0xaa3   : > { %v1361_v26 = vpop.xlane.xlu0 %1360 }
 0xaa4   : > { %1990 = vrcp.f32 %v1361_v26 }
 0xaae   : > { %v1991_v27 = vpop.eup %1990 }
 0xaaf   : > { %v1363_v28 = vmul.f32 %v1991_v27, %v1989_v20 }
 0xab1   : > { %1862 = vmatmul.mubr.msk.f32.vlgmr.msra.gmra.mrb[12].mxu1 %vm545_vm2, %v1363_v28 }
 0xb84   : > { %v1435_v29 = vpop.f32.mrb[12].mxu1 }
 0xb85   : > { %v1863_v30 = vpop.f32.mrb[13].mxu1  ;;  %1867 = vmatmul.mubr.msk.f32.vlgmr.msra.gmra.mrb[10].mxu0 %vm545_vm2, %v1435_v29 }
 0xc58   : > { %v1510_v31 = vpop.f32.mrb[10].mxu0 }
 0xc59   : > { %v1514_v32 = vadd.f32 %v1510_v31, %v1268_v1  ;;  %v1868_v33 = vpop.f32.mrb[11].mxu0 }
 0xc5b   : > { %v1515_v34 = vadd.f32 %v1514_v32, %v2598_v8  ;;  %v1761_v8 = vld [vmem:[%s2751_s6] ss:$0 sm:$0xff] }
 0xc5d   : > { %v1516_v35 = vsel %vm463_vm1, %v1515_v34, 0.0 }
 0xc5e   : > { %1517 = vadd.xlane.f32.xlu0 %v1516_v35 }
 0xceb   : > { %v1518_v36 = vpop.xlane.xlu0 %1517 }
 0xcec   : > { %v1520_v37 = vmul.f32 0.03125, %v1518_v36 }
 0xcee   : > { %v1521_v38 = vsub.f32 %v1515_v34, %v1520_v37 }
 0xcf0   : > { %v1522_v39 = vmul.f32 %v1521_v38, %v1521_v38 }
 0xcf2   : > { %v1523_v40 = vsel %vm463_vm1, %v1522_v39, 0.0 }
 0xcf3   : > { %1524 = vadd.xlane.f32.xlu0 %v1523_v40 }
 0xd80   : > { %v1525_v41 = vpop.xlane.xlu0 %1524 }
 0xd81   : > { %v1526_v42 = vmul.f32 0.03125, %v1525_v41 }
 0xd83   : > { %v1527_v43 = vadd.f32 1e-05, %v1526_v42 }
 0xd85   : > { %1992 = vrsqrt.f32 %v1527_v43 }
 0xd8f   : > { %v1993_v44 = vpop.eup %1992 }
 0xd90   : > { %v1529_v45 = vmul.f32 %v1993_v44, %v1521_v38 }
 0xd92   : > { %v1537_v47 = vmul.f32 %v1761_v8, %v1529_v45 }
 0xd94   : > { %v1545_v48 = vadd.f32 %v1762_v46, %v1537_v47 }
 0xd96   : > { %1546 = vst.msk [vmem:[%s453_s13] sm:$0xff] %vm463_vm1, %v1545_v48 }
 0xd97   : > { %2153 = shalt.err (!%p2150_p9)
}
 0xd98   : > { %s2154_s15 = scalar_lea.hbm %s2695_s18, 128  ;;  %s2158_s27 = scalar_lea.hbm %s2795_s14, 256 }
 0xd99   : > { %p2155_p13 = scmp.ne.s32.totalorder %s2695_s18, %s2154_s15  ;;  %p2159_p5 = scmp.lt.u32.totalorder %s2695_s18, %s2795_s14 }
 0xd9a   : > { %p2160_p10 = scmp.lt.u32.totalorder %s2158_s27, %s2154_s15  ;;  %p2162_p8 = scmp.lt.u32.totalorder %s2154_s15, %s2695_s18 }
 0xd9b   : > { %p2156_p7 = pnand %p2155_p13, %p2796_p12 }
 0xd9c   : > { %p2161_p3 = por %p2160_p10, %p2159_p5 }
 0xd9d   : > { %p2157_p0 = pneg %p2156_p7 }
 0xd9e   : > { %p2163_p1 = por %p2162_p8, %p2161_p3 }
 0xda0   : > { %p2164_p6 = pnand %p2163_p1, %p2157_p0 }
 0xda2   : > { %2167 = shalt.err (!%p2164_p6)
}
 0xda3   : > { %1889 = dma.vmem_to_hbm [thread:$0]  (%p2796_p12), %s2697_s22, 128, %s2695_s18, %s1548_s23  }
 0xda4 PF: > { %s2797_s20 = sld [smem:[#allocation16_spill]]  ;;  %s2798_s2 = sld [smem:[#allocation21_spill]] }
 0xda5   : > { %s2799_s8 = sld [smem:[#allocation18_spill]] }
 0xdaa   : > { %s1574_s19 = sand.u32 1, %s2797_s20   ;;  %p2800_p2 = scmp.ne.s32.totalorder %s2798_s2, 0 }
 0xdab   : > { %p2801_p4 = scmp.ge.s32.totalorder %s2799_s8, 2  ;;  %s1575_s25 = scalar_lea.sflag [#allocation4], %s1574_s19 }
 0xdad   : > { %p1909_p11 = pnand %p2801_p4, %p2800_p2 }
 0xdaf   : > { %2209 = dma.done.wait (!%p1909_p11), %s1575_s25, 128  }
 0xdb0   : > { %2211 = vsyncadd (!%p1909_p11), %s1575_s25, 4294967168  ;;  %s25_s10 = sadd.s32 1, %s2799_s8   ;;  %s2802_s13 = sld [smem:[#allocation17_spill]] }
 0xdb1   : > { %p22_p9 = scmp.ge.s32.totalorder %s25_s10, 4   ;;  %s2803_s29 = sld [smem:[#allocation20_spill]] }
 0xdb2   : > { %s2804_s24 = sld [smem:[#allocation19_spill]]  ;;  %s2805_s27 = smov %s2218_s28 }
 0xdb3   : > { %s2807_s30 = smov %s2230_s9  ;;  %24 = sbr.rel (!%p22_p9) target bundleno = 11 (0xb), region = 142 }
 0xdb6   : > { %s2806_s28 = smov %s2802_s13 }
 0xdb8   : > { %s2808_s9 = smov %s2804_s24 }
 0xdba   :  { %1580 = vsyncpa [#allocation3], 1 }
 0xdbb   :  { %1582 = vsyncpa [#allocation3 + $0x1], 1 }
 0xdbc   :  { %1583 = vsyncpa [#allocation6], 1 }
 0xdbd   :  { %1584 = vsyncpa [#allocation4], 1 }
 0xdbe   :  { %1586 = vsyncpa [#allocation4 + $0x1], 1 }

</bundles_post_ra>
